<compile_context>
chip_gen: v7x
topology: tpu7x:2x2x1
jax: 0.10.0
libtpu: 0.0.40
codegen_flags: <defaults>
</compile_context>

<pallas_src>
import jax
import jax.numpy as jnp
from jax.experimental import pallas as pl
from jax.experimental.pallas import tpu as pltpu


def _round_up(x, m):
    return ((x + m - 1) // m) * m


def _silu_f32(x):
    # SiLU(x) = x * sigmoid(x) = x / (1 + exp(-x)).
    # exp -> EUP, reciprocal(approx=True) -> EUP vrcp: keeps the activation off
    # the VPU divide path (VALU is the likeliest binding slot once the memory
    # path is lane-dense, especially on v5e).
    return x * pl.reciprocal(1.0 + jnp.exp(-x), approx=True)


def _block_diag(w, g):
    """(k, m) -> (g*k, g*m) block-diagonal replication of w (built once, wrapper-side)."""
    k, m = w.shape
    eye = jnp.eye(g, dtype=w.dtype)
    return jnp.einsum('ab,ij->aibj', eye, w).reshape(g * k, g * m)


def mlp_kernel(x_ref, w0_ref, w1_ref, wo_ref, bo_ref, o_ref):
    # Layer 0: Linear (no bias) + SiLU.  Matmuls run in the compute dtype
    # (bf16 by default) with f32 accumulation on the MXU.
    h = jnp.dot(x_ref[...], w0_ref[...], preferred_element_type=jnp.float32)
    h = _silu_f32(h).astype(w1_ref.dtype)
    # Layer 1: Linear (no bias) + SiLU.
    h = jnp.dot(h, w1_ref[...], preferred_element_type=jnp.float32)
    h = _silu_f32(h).astype(wo_ref.dtype)
    # DistLayer output Linear (with bias), dist='mse' -> raw mode tensor.
    out = jnp.dot(h, wo_ref[...], preferred_element_type=jnp.float32)
    out = out + bo_ref[...]                      # (1, G*out_dim) f32, lane-dense
    o_ref[...] = out.astype(o_ref.dtype)


def mlp_forward(features, params, *, tm_packed=None, use_bf16=True):
    """Runs the fused MLP forward. Returns the MSEDist mode tensor.

    use_bf16=False keeps everything in f32 for callers needing full fidelity.
    """
    w0, w1, wo, bo = params
    in_dim = features.shape[-1]
    units = w0.shape[1]
    out_dim = wo.shape[1]

    x = features.reshape((-1, in_dim))
    n = x.shape[0]
    out_dtype = features.dtype
    out_itemsize = jnp.dtype(out_dtype).itemsize

    # --- Row packing factor: make the packed output dim a full 128-lane register.
    if 128 % out_dim == 0:
        G = 128 // out_dim
        # Keep the packed hidden weight (G*units)^2 reasonable.
        G = max(1, min(G, max(1, 1024 // max(units, 1))))
    else:
        G = 1  # falls back to the (correct but lane-sparse) unpacked layout
    gi, gu, go = G * in_dim, G * units, G * out_dim

    # --- Pad rows to a multiple of G (zero-pad: keeps the block-diagonal math
    # exact, no Inf/NaN leakage across lane groups), then to 8 packed sublanes.
    n_g = pl.cdiv(n, G)
    n_p = _round_up(max(n_g, 1), 8)              # packed rows in the kernel
    n_rows_padded = n_p * G
    if n_rows_padded != n:
        x = jnp.pad(x, ((0, n_rows_padded - n), (0, 0)))

    compute_dtype = jnp.bfloat16 if use_bf16 else jnp.float32
    itemsize_c = jnp.dtype(compute_dtype).itemsize

    x_p = x.reshape(n_p, gi).astype(compute_dtype)
    w0_p = _block_diag(w0.astype(compute_dtype), G)                # (gi, gu)
    w1_p = _block_diag(w1.astype(compute_dtype), G)                # (gu, gu)
    wo_p = _block_diag(wo.astype(compute_dtype), G)                # (gu, go)
    bo_p = jnp.tile(bo.reshape(-1).astype(jnp.float32), (G,)).reshape(1, go)

    # --- Row-tile selection (packed rows):
    #   * big tiles (512 packed = 8192 original rows) amortize the ~0.35us
    #     per-grid-step overhead and keep HBM near roofline,
    #   * but keep >=2-4 grid steps for large inputs so ("parallel",) megacore
    #     sharding can use both v7x TensorCores,
    #   * tiny inputs collapse to a single step.
    if tm_packed is None:
        tm_p = min(512, max(128, _round_up(pl.cdiv(n_p, 4), 8)))
    else:
        tm_p = tm_packed
    tm_p = max(8, min(_round_up(tm_p, 8), _round_up(n_p, 8)))
    grid = (pl.cdiv(n_p, tm_p),)

    # --- Advisory cost estimate (packed/block-diagonal FLOPs actually executed;
    # sigmoid counted as exp + reciprocal per hidden element per layer).
    cost = pl.CostEstimate(
        flops=int(2 * n_p * (gi * gu + gu * gu + gu * go)),
        transcendentals=int(2 * 2 * n_p * gu),
        bytes_accessed=int(n_p * gi * itemsize_c
                           + (gi * gu + gu * gu + gu * go) * itemsize_c
                           + go * 4
                           + n_p * go * out_itemsize),
    )

    # --- VMEM budget from the actual working set (weights assumed double-buffered
    # worst case, streamed x/out tiles double-buffered, f32 intermediates), with
    # headroom; capped at 48 MiB so we never claim all of v7x's 64 MiB per TC.
    weight_bytes = (gi * gu + gu * gu + gu * go) * itemsize_c + go * 4
    tile_bytes = 2 * tm_p * gi * itemsize_c + 2 * tm_p * go * out_itemsize
    interm_bytes = 3 * tm_p * gu * 4
    vmem_limit = int(min(max(2 * weight_bytes + tile_bytes + interm_bytes + (4 << 20),
                             8 << 20), 48 << 20))

    call = pl.pallas_call(
        mlp_kernel,
        out_shape=jax.ShapeDtypeStruct((n_p, go), out_dtype),
        grid_spec=pltpu.PrefetchScalarGridSpec(
            num_scalar_prefetch=0,
            grid=grid,
            in_specs=[
                pl.BlockSpec((tm_p, gi), lambda i: (i, 0)),   # streamed activations
                pl.BlockSpec((gi, gu), lambda i: (0, 0)),     # resident weights
                pl.BlockSpec((gu, gu), lambda i: (0, 0)),
                pl.BlockSpec((gu, go), lambda i: (0, 0)),
                pl.BlockSpec((1, go), lambda i: (0, 0)),      # packed bias
            ],
            out_specs=pl.BlockSpec((tm_p, go), lambda i: (i, 0)),
        ),
        compiler_params=pltpu.CompilerParams(
            dimension_semantics=("parallel",),
            vmem_limit_bytes=vmem_limit,
        ),
        cost_estimate=cost,
    )
    out_p = call(x_p, w0_p, w1_p, wo_p, bo_p)

    out = out_p.reshape(n_p * G, out_dim)[:n]
    return out.reshape(features.shape[:-1] + (out_dim,))


def make_params(key, in_dim, units, out_dim, dtype=jnp.float32):
    """Deterministic synthetic weights (shapes match MLP.__init__ with
    layers=2, norm='none', dist='mse')."""
    k0, k1, k2, k3 = jax.random.split(key, 4)
    # nn.Linear stores weight as (out, in); we keep (in, out) for x @ W.
    w0 = (jax.random.normal(k0, (in_dim, units), dtype) / jnp.sqrt(in_dim)).astype(dtype)
    w1 = (jax.random.normal(k1, (units, units), dtype) / jnp.sqrt(units)).astype(dtype)
    wo = (jax.random.normal(k2, (units, out_dim), dtype) / jnp.sqrt(units)).astype(dtype)
    bo = (0.01 * jax.random.normal(k3, (1, out_dim), dtype)).astype(dtype)
    return w0, w1, wo, bo


def mlp_reference(features, params):
    w0, w1, wo, bo = params
    x = features.reshape((-1, features.shape[-1])).astype(jnp.float32)
    h = x @ w0
    h = h * jax.nn.sigmoid(h)
    h = h @ w1
    h = h * jax.nn.sigmoid(h)
    out = h @ wo + bo
    return out.reshape(features.shape[:-1] + (wo.shape[1],)).astype(features.dtype)


if __name__ == "__main__":
    # MLP(in_shape=16, shape=8, layers=2, units=32, act='SiLU', norm='none', dist='mse')
    B, T, IN_DIM = 2, 8, 16
    UNITS, OUT_DIM = 32, 8

    key = jax.random.PRNGKey(0)
    kx, kp = jax.random.split(key)
    features = jax.random.normal(kx, (B, T, IN_DIM), jnp.float32)
    params = make_params(kp, IN_DIM, UNITS, OUT_DIM)

    out = mlp_forward(features, params)
    out = jax.block_until_ready(out)

    ref = mlp_reference(features, params)
    assert out.shape == (B, T, OUT_DIM), out.shape
    # bf16 matmuls + approx reciprocal with f32 accumulation: loosened tolerance.
    assert jnp.allclose(out, ref, atol=5e-2, rtol=5e-2), "mismatch vs reference"

    # TODO(synk): MSEDist / other DistLayer distribution wrappers (log_prob etc.)
    # are host-side objects; only the tensor-producing hot path is in the kernel.
    print("KERNEL_OK")
</pallas_src>

<mosaic_0001>
module attributes {stable_mosaic.version = 11 : i64} {
  func.func @mlp_kernel(%arg0: i32, %arg1: memref<8x256xbf16, #tpu.memory_space<vmem>>, %arg2: memref<256x512xbf16, #tpu.memory_space<vmem>>, %arg3: memref<512x512xbf16, #tpu.memory_space<vmem>>, %arg4: memref<512x128xbf16, #tpu.memory_space<vmem>>, %arg5: memref<1x128xf32, #tpu.memory_space<vmem>>, %arg6: memref<8x128xf32, #tpu.memory_space<vmem>>) attributes {dimension_semantics = [#tpu.dimension_semantics<parallel>], iteration_bounds = array<i64: 1>, scalar_prefetch = 0 : i64, scratch_operands = 0 : i64, tpu.core_type = #tpu.core_type<tc>, window_params = [{transform_indices = @transform_0, window_bounds = array<i64: 8, 256>}, {pipeline_mode = #tpu.pipeline_mode<synchronous>, transform_indices = @transform_1, window_bounds = array<i64: 256, 512>}, {pipeline_mode = #tpu.pipeline_mode<synchronous>, transform_indices = @transform_2, window_bounds = array<i64: 512, 512>}, {pipeline_mode = #tpu.pipeline_mode<synchronous>, transform_indices = @transform_3, window_bounds = array<i64: 512, 128>}, {pipeline_mode = #tpu.pipeline_mode<synchronous>, transform_indices = @transform_4, window_bounds = array<i64: 1, 128>}, {transform_indices = @transform_5, window_bounds = array<i64: 8, 128>}]} {
    %c0 = arith.constant 0 : index
    %c0_0 = arith.constant 0 : index
    %0 = vector.load %arg1[%c0, %c0_0] : memref<8x256xbf16, #tpu.memory_space<vmem>>, vector<8x256xbf16>
    %c0_1 = arith.constant 0 : index
    %c0_2 = arith.constant 0 : index
    %1 = vector.load %arg2[%c0_1, %c0_2] : memref<256x512xbf16, #tpu.memory_space<vmem>>, vector<256x512xbf16>
    %cst = arith.constant dense<0.000000e+00> : vector<8x512xf32>
    %2 = tpu.matmul %0, %1, %cst {dimension_numbers = #tpu.dot_dimension_numbers<[1], [0], [0], [1], [0, 0, 1, 1], [], []>} : vector<8x256xbf16>, vector<256x512xbf16>, vector<8x512xf32> -> vector<8x512xf32>
    %cst_3 = arith.constant 0.000000e+00 : f32
    %3 = vector.broadcast %cst_3 : f32 to vector<8x512xf32>
    %4 = arith.subf %3, %2 : vector<8x512xf32>
    %5 = math.exp %4 : vector<8x512xf32>
    %cst_4 = arith.constant 1.000000e+00 : f32
    %6 = vector.broadcast %cst_4 : f32 to vector<8x512xf32>
    %7 = arith.addf %6, %5 : vector<8x512xf32>
    %8 = tpu.reciprocal %7 {approx = true} : vector<8x512xf32> -> vector<8x512xf32>
    %9 = arith.mulf %2, %8 : vector<8x512xf32>
    %10 = arith.truncf %9 : vector<8x512xf32> to vector<8x512xbf16>
    %c0_5 = arith.constant 0 : index
    %c0_6 = arith.constant 0 : index
    %11 = vector.load %arg3[%c0_5, %c0_6] : memref<512x512xbf16, #tpu.memory_space<vmem>>, vector<512x512xbf16>
    %cst_7 = arith.constant dense<0.000000e+00> : vector<8x512xf32>
    %12 = tpu.matmul %10, %11, %cst_7 {dimension_numbers = #tpu.dot_dimension_numbers<[1], [0], [0], [1], [0, 0, 1, 1], [], []>} : vector<8x512xbf16>, vector<512x512xbf16>, vector<8x512xf32> -> vector<8x512xf32>
    %cst_8 = arith.constant 0.000000e+00 : f32
    %13 = vector.broadcast %cst_8 : f32 to vector<8x512xf32>
    %14 = arith.subf %13, %12 : vector<8x512xf32>
    %15 = math.exp %14 : vector<8x512xf32>
    %cst_9 = arith.constant 1.000000e+00 : f32
    %16 = vector.broadcast %cst_9 : f32 to vector<8x512xf32>
    %17 = arith.addf %16, %15 : vector<8x512xf32>
    %18 = tpu.reciprocal %17 {approx = true} : vector<8x512xf32> -> vector<8x512xf32>
    %19 = arith.mulf %12, %18 : vector<8x512xf32>
    %20 = arith.truncf %19 : vector<8x512xf32> to vector<8x512xbf16>
    %c0_10 = arith.constant 0 : index
    %c0_11 = arith.constant 0 : index
    %21 = vector.load %arg4[%c0_10, %c0_11] : memref<512x128xbf16, #tpu.memory_space<vmem>>, vector<512x128xbf16>
    %cst_12 = arith.constant dense<0.000000e+00> : vector<8x128xf32>
    %22 = tpu.matmul %20, %21, %cst_12 {dimension_numbers = #tpu.dot_dimension_numbers<[1], [0], [0], [1], [0, 0, 1, 1], [], []>} : vector<8x512xbf16>, vector<512x128xbf16>, vector<8x128xf32> -> vector<8x128xf32>
    %c0_13 = arith.constant 0 : index
    %c0_14 = arith.constant 0 : index
    %23 = vector.load %arg5[%c0_13, %c0_14] : memref<1x128xf32, #tpu.memory_space<vmem>>, vector<1x128xf32>
    %24 = vector.broadcast %23 : vector<1x128xf32> to vector<8x128xf32>
    %25 = arith.addf %22, %24 : vector<8x128xf32>
    %c0_15 = arith.constant 0 : index
    %c0_16 = arith.constant 0 : index
    %26 = vector.load %arg6[%c0_15, %c0_16] : memref<8x128xf32, #tpu.memory_space<vmem>>, vector<8x128xf32>
    tpu.vector_store %arg6[%c0_15, %c0_16], %25 {strides = array<i32>} : memref<8x128xf32, #tpu.memory_space<vmem>>, vector<8x128xf32>,
    return
  }
  func.func @transform_0(%arg0: i32) -> (i32, i32) {
    %c0_i32 = arith.constant 0 : i32
    %c0_i32_0 = arith.constant 0 : i32
    return %arg0, %c0_i32 : i32, i32
  }
  func.func @transform_1(%arg0: i32) -> (i32, i32) {
    %c0_i32 = arith.constant 0 : i32
    %c0_i32_0 = arith.constant 0 : i32
    %c0_i32_1 = arith.constant 0 : i32
    return %c0_i32, %c0_i32_0 : i32, i32
  }
  func.func @transform_2(%arg0: i32) -> (i32, i32) {
    %c0_i32 = arith.constant 0 : i32
    %c0_i32_0 = arith.constant 0 : i32
    %c0_i32_1 = arith.constant 0 : i32
    return %c0_i32, %c0_i32_0 : i32, i32
  }
  func.func @transform_3(%arg0: i32) -> (i32, i32) {
    %c0_i32 = arith.constant 0 : i32
    %c0_i32_0 = arith.constant 0 : i32
    %c0_i32_1 = arith.constant 0 : i32
    return %c0_i32, %c0_i32_0 : i32, i32
  }
  func.func @transform_4(%arg0: i32) -> (i32, i32) {
    %c0_i32 = arith.constant 0 : i32
    %c0_i32_0 = arith.constant 0 : i32
    %c0_i32_1 = arith.constant 0 : i32
    return %c0_i32, %c0_i32_0 : i32, i32
  }
  func.func @transform_5(%arg0: i32) -> (i32, i32) {
    %c0_i32 = arith.constant 0 : i32
    %c0_i32_0 = arith.constant 0 : i32
    return %arg0, %c0_i32 : i32, i32
  }
}

</mosaic_0001>

<bundles_post_ra>
// kernel: tpu_custom_call.1
= control target key start
LH: loop header
LB: loop body
LE: loop exit
PB: predicated region body
PF: predicated region fallthrough
CT: control target
= control target key end

     0   :  { %10 = vsyncpa [#allocation3], 0  ;;  %s2770_s0 = inlined_call_operand.hbm [shape: bf16[8,256], index: 0, kind: input, shape index: {}]   ;;  %s2771_s1 = inlined_call_operand.hbm [shape: bf16[256,512], index: 1, kind: input, shape index: {}]   ;;  %s2772_s2 = inlined_call_operand.hbm [shape: bf16[512,512], index: 2, kind: input, shape index: {}]   ;;  %s2773_s3 = inlined_call_operand.hbm [shape: bf16[512,128], index: 3, kind: input, shape index: {}]   ;;  %s2774_s4 = inlined_call_operand.vmem [shape: f32[1,128], index: 4, kind: input, shape index: {}]   ;;  %s2775_s5 = inlined_call_operand.hbm [shape: f32[8,128], index: 5, kind: output, shape index: {}]  }
   0x1   :  { %11 = vsyncpa [#allocation6], 0 }
   0x2   :  { %12 = vsyncpa [#allocation9], 0 }
   0x3   :  { %13 = vsyncpa [#allocation4], 0  ;;  %s2658_s18 = smov [#allocation5]   ;;  %s2540_s22 = scalar_lea.hbm %s2771_s1, 8192 }
   0x4   :  { %s29_s19 = sshll.u32 %s2658_s18, 4  ;;  %p2541_p0 = scmp.ne.s32.totalorder %s2771_s1, %s2540_s22  ;;  %s30_s19 = int_to_ptr.vmem [resolvable:$true] %s29_s19 }
   0x5   :  { %p2544_p1 = scmp.lt.u32.totalorder %s2540_s22, %s2771_s1 }
   0x7   :  { %p2546_p2 = pnand %p2544_p1, %p2541_p0 }
   0x9   :  { %2549 = shalt.err (!%p2546_p2)
}
   0xa   :  { %s2550_s27 = scalar_lea.vmem %s30_s19, 8192  ;;  %p2555_p4 = scmp.lt.s32.totalorder %s30_s19, %s30_s19 }
   0xb   :  { %p2551_p3 = scmp.ne.s32.totalorder %s30_s19, %s2550_s27  ;;  %p2556_p5 = scmp.lt.s32.totalorder %s2550_s27, %s2550_s27 }
   0xd   :  { %p2557_p6 = por %p2556_p5, %p2555_p4 }
   0xf   :  { %p2558_p7 = pnand %p2557_p6, %p2551_p3 }
  0x11   :  { %2561 = shalt.err (!%p2558_p7)
}
  0x12   :  { %s2659_s28 = smov 256   ;;  %s2660_s29 = smov 16  }
  0x13   :  { %35 = dma.hbm_to_vmem [thread:$0]  %s2771_s1, 8192, %s30_s19, [#allocation6], %s2659_s28, %s2659_s28, %s2660_s29  }
  0x14   :  { %s2661_s7 = smov [#allocation2]   ;;  %s2662_s9 = smov [#allocation7]  }
  0x15   :  { %s20_s8 = sshll.u32 %s2661_s7, 4  ;;  %s41_s10 = sshll.u32 %s2662_s9, 4  ;;  %s21_s8 = int_to_ptr.vmem [resolvable:$true] %s20_s8  ;;  %s42_s10 = int_to_ptr.vmem [resolvable:$true] %s41_s10 }
  0x16   :  { %s2562_s13 = scalar_lea.hbm %s2770_s0, 128 }
  0x17   :  { %p2563_p8 = scmp.ne.s32.totalorder %s2770_s0, %s2562_s13  ;;  %p2566_p9 = scmp.lt.u32.totalorder %s2562_s13, %s2770_s0 }
  0x19   :  { %p2568_p10 = pnand %p2566_p9, %p2563_p8 }
  0x1b   :  { %2571 = shalt.err (!%p2568_p10)
}
  0x1c   :  { %s2572_s1 = scalar_lea.vmem %s21_s8, 128  ;;  %p2577_p12 = scmp.lt.s32.totalorder %s21_s8, %s21_s8 }
  0x1d   :  { %p2573_p11 = scmp.ne.s32.totalorder %s21_s8, %s2572_s1  ;;  %p2578_p13 = scmp.lt.s32.totalorder %s2572_s1, %s2572_s1 }
  0x1f   :  { %p2579_p0 = por %p2578_p13, %p2577_p12 }
  0x21   :  { %p2580_p1 = pnand %p2579_p0, %p2573_p11 }
  0x23   :  { %2583 = shalt.err (!%p2580_p1)
}
  0x24   :  { %23 = dma.hbm_to_vmem [thread:$0]  %s2770_s0, 128, %s21_s8, [#allocation3]  }
  0x25   :  { %s2584_s22 = scalar_lea.hbm %s2772_s2, 16384 }
  0x26   :  { %p2585_p2 = scmp.ne.s32.totalorder %s2772_s2, %s2584_s22  ;;  %p2588_p3 = scmp.lt.u32.totalorder %s2584_s22, %s2772_s2 }
  0x28   :  { %p2590_p4 = pnand %p2588_p3, %p2585_p2 }
  0x2a   :  { %2593 = shalt.err (!%p2590_p4)
}
  0x2b   :  { %s2594_s27 = scalar_lea.vmem %s42_s10, 16384  ;;  %p2599_p6 = scmp.lt.s32.totalorder %s42_s10, %s42_s10 }
  0x2c   :  { %p2595_p5 = scmp.ne.s32.totalorder %s42_s10, %s2594_s27  ;;  %p2600_p7 = scmp.lt.s32.totalorder %s2594_s27, %s2594_s27 }
  0x2e   :  { %p2601_p8 = por %p2600_p7, %p2599_p6 }
  0x30   :  { %p2602_p9 = pnand %p2601_p8, %p2595_p5 }
  0x32   :  { %2605 = shalt.err (!%p2602_p9)
}
  0x33   :  { %47 = dma.hbm_to_vmem [thread:$0]  %s2772_s2, 16384, %s42_s10, [#allocation6], %s2659_s28, %s2659_s28, %s2660_s29  }
  0x34   :  { %s2663_s6 = smov [#allocation8]   ;;  %s2606_s11 = scalar_lea.hbm %s2773_s3, 4096 }
  0x35   :  { %s53_s7 = sshll.u32 %s2663_s6, 4  ;;  %p2607_p10 = scmp.ne.s32.totalorder %s2773_s3, %s2606_s11  ;;  %s54_s7 = int_to_ptr.vmem [resolvable:$true] %s53_s7 }
  0x36   :  { %p2610_p11 = scmp.lt.u32.totalorder %s2606_s11, %s2773_s3 }
  0x38   :  { %p2612_p12 = pnand %p2610_p11, %p2607_p10 }
  0x3a   :  { %2615 = shalt.err (!%p2612_p12)
}
  0x3b   :  { %s2616_s16 = scalar_lea.vmem %s54_s7, 4096  ;;  %p2621_p0 = scmp.lt.s32.totalorder %s54_s7, %s54_s7 }
  0x3c   :  { %p2617_p13 = scmp.ne.s32.totalorder %s54_s7, %s2616_s16  ;;  %p2622_p1 = scmp.lt.s32.totalorder %s2616_s16, %s2616_s16 }
  0x3e   :  { %p2623_p2 = por %p2622_p1, %p2621_p0 }
  0x40   :  { %p2624_p3 = pnand %p2623_p2, %p2617_p13 }
  0x42   :  { %2627 = shalt.err (!%p2624_p3)
}
  0x43   :  { %s2664_s2 = smov 64   ;;  %s2665_s28 = smov 4  }
  0x44   :  { %59 = dma.hbm_to_vmem [thread:$0]  %s2773_s3, 4096, %s54_s7, [#allocation9], %s2664_s2, %s2664_s2, %s2665_s28  }
  0x45   :  { %2650 = dma.done.wait [#allocation3], 128  }
  0x46   :  { %2651 = vsyncadd [#allocation3], 4294967168 }
  0x47   :  { %2652 = dma.done.wait [#allocation6], 24576  }
  0x48   :  { %2653 = vsyncadd [#allocation6], 4294942720 }
  0x49   :  { %2654 = dma.done.wait [#allocation9], 4096  }
  0x4a   :  { %2655 = vsyncadd [#allocation9], 4294963200  ;;  %v2186_v0 = vld [vmem:[#allocation5 + $0x4] ss:$16 sps:$4 sm:$0xff]   ;;  %v2188_v1 = vld [vmem:[#allocation5] ss:$16 sps:$4 sm:$0xff]  }
  0x4b   :  { %467 = vmatprep.subr.bf16.mxu0 %v2186_v0  ;;  %v2189_v2 = vld [vmem:[#allocation5 + $0x24] ss:$16 sps:$4 sm:$0xff]   ;;  %v2191_v3 = vld [vmem:[#allocation5 + $0x20] ss:$16 sps:$4 sm:$0xff]   ;;  %v2213_v9 = vld [vmem:[#allocation5 + $0xc] ss:$16 sps:$4 sm:$0xff]  }
  0x4c   :  { %468 = vmatpush1.bf16.msra.mxu0 %v2188_v1  ;;  %v2192_v4 = vld [vmem:[#allocation5 + $0x44] ss:$16 sps:$4 sm:$0xff]   ;;  %v2194_v5 = vld [vmem:[#allocation5 + $0x40] ss:$16 sps:$4 sm:$0xff]   ;;  %v2215_v10 = vld [vmem:[#allocation5 + $0x8] ss:$16 sps:$4 sm:$0xff]   ;;  %508 = vmatprep.subr.bf16.mxu1 %v2213_v9 }
  0x4d   :  { %469 = vmatprep.subr.bf16.mxu0 %v2189_v2  ;;  %v2195_v6 = vld [vmem:[#allocation5 + $0x64] ss:$16 sps:$4 sm:$0xff]   ;;  %v2197_v7 = vld [vmem:[#allocation5 + $0x60] ss:$16 sps:$4 sm:$0xff]   ;;  %509 = vmatpush1.bf16.msra.mxu1 %v2215_v10  ;;  %v2219_v12 = vld [vmem:[#allocation5 + $0x2c] ss:$16 sps:$4 sm:$0xff]  }
  0x4e   :  { %v2198_v8 = vld [vmem:[#allocation5 + $0x84] ss:$16 sps:$4 sm:$0xff]   ;;  %v2200_v11 = vld [vmem:[#allocation5 + $0x80] ss:$16 sps:$4 sm:$0xff]   ;;  %v2221_v13 = vld [vmem:[#allocation5 + $0x28] ss:$16 sps:$4 sm:$0xff]   ;;  %510 = vmatprep.subr.bf16.mxu1 %v2219_v12 }
  0x4f   :  { %v2201_v14 = vld [vmem:[#allocation5 + $0xa4] ss:$16 sps:$4 sm:$0xff]   ;;  %v2203_v15 = vld [vmem:[#allocation5 + $0xa0] ss:$16 sps:$4 sm:$0xff]   ;;  %v2225_v16 = vld [vmem:[#allocation5 + $0x4c] ss:$16 sps:$4 sm:$0xff]  }
  0x50   :  { %470 = vmatpush1.bf16.msra.mxu0 %v2191_v3  ;;  %v2204_v17 = vld [vmem:[#allocation5 + $0xc4] ss:$16 sps:$4 sm:$0xff]   ;;  %v2227_v18 = vld [vmem:[#allocation5 + $0x48] ss:$16 sps:$4 sm:$0xff]   ;;  %v2231_v19 = vld [vmem:[#allocation5 + $0x6c] ss:$16 sps:$4 sm:$0xff]  }
  0x51   :  { %471 = vmatprep.subr.bf16.mxu0 %v2192_v4  ;;  %511 = vmatpush1.bf16.msra.mxu1 %v2221_v13  ;;  %v2206_v20 = vld [vmem:[#allocation5 + $0xc0] ss:$16 sps:$4 sm:$0xff]   ;;  %v2207_v21 = vld [vmem:[#allocation5 + $0xe4] ss:$16 sps:$4 sm:$0xff]   ;;  %v2233_v22 = vld [vmem:[#allocation5 + $0x68] ss:$16 sps:$4 sm:$0xff]  }
  0x52   :  { %512 = vmatprep.subr.bf16.mxu1 %v2225_v16  ;;  %v2237_v23 = vld [vmem:[#allocation5 + $0x8c] ss:$16 sps:$4 sm:$0xff]   ;;  %v2209_v24 = vld [vmem:[#allocation5 + $0xe0] ss:$16 sps:$4 sm:$0xff]   ;;  %v2210_v25 = vld [vmem:[#allocation5 + $0x104] ss:$16 sps:$4 sm:$0xff]  }
  0x53   :  { %v2239_v26 = vld [vmem:[#allocation5 + $0x88] ss:$16 sps:$4 sm:$0xff]   ;;  %v2243_v27 = vld [vmem:[#allocation5 + $0xac] ss:$16 sps:$4 sm:$0xff]   ;;  %v2212_v28 = vld [vmem:[#allocation5 + $0x100] ss:$16 sps:$4 sm:$0xff]  }
  0x54   :  { %472 = vmatpush1.bf16.msra.mxu0 %v2194_v5  ;;  %v2216_v29 = vld [vmem:[#allocation5 + $0x124] ss:$16 sps:$4 sm:$0xff]   ;;  %v2245_v30 = vld [vmem:[#allocation5 + $0xa8] ss:$16 sps:$4 sm:$0xff]   ;;  %v2249_v32 = vld [vmem:[#allocation5 + $0xcc] ss:$16 sps:$4 sm:$0xff]  }
  0x55   :  { %473 = vmatprep.subr.bf16.mxu0 %v2195_v6  ;;  %513 = vmatpush1.bf16.msra.mxu1 %v2227_v18  ;;  %v75_v31 = vld [vmem:[#allocation2] sm:$0xff]  ;;  %v2218_v34 = vld [vmem:[#allocation5 + $0x120] ss:$16 sps:$4 sm:$0xff]   ;;  %v2222_v35 = vld [vmem:[#allocation5 + $0x144] ss:$16 sps:$4 sm:$0xff]   ;;  %s2666_s1 = smov [#allocation10]  }
  0x56   :  { %514 = vmatprep.subr.bf16.mxu1 %v2231_v19  ;;  %v1899_v33 = vcombine.high %v75_v31, %v75_v31  ;;  %v2251_v36 = vld [vmem:[#allocation5 + $0xc8] ss:$16 sps:$4 sm:$0xff]   ;;  %v2255_v37 = vld [vmem:[#allocation5 + $0xec] ss:$16 sps:$4 sm:$0xff]   ;;  %v2224_v38 = vld [vmem:[#allocation5 + $0x140] ss:$16 sps:$4 sm:$0xff]   ;;  %v1898_v62 = vcombine.low %v75_v31, %v75_v31 }
  0x57   :  { %v2228_v39 = vld [vmem:[#allocation5 + $0x164] ss:$16 sps:$4 sm:$0xff]   ;;  %v2259_v40 = vld [vmem:[#allocation5 + $0xe8] ss:$16 sps:$4 sm:$0xff]   ;;  %v2260_v41 = vld [vmem:[#allocation5 + $0x10c] ss:$16 sps:$4 sm:$0xff]  }
  0x58   :  { %474 = vmatpush1.bf16.msra.mxu0 %v2197_v7  ;;  %499 = vmatprep.mubr.bf16.mxu0 %v1899_v33  ;;  %v2230_v42 = vld [vmem:[#allocation5 + $0x160] ss:$16 sps:$4 sm:$0xff]   ;;  %v2234_v43 = vld [vmem:[#allocation5 + $0x184] ss:$16 sps:$4 sm:$0xff]   ;;  %v2262_v44 = vld [vmem:[#allocation5 + $0x108] ss:$16 sps:$4 sm:$0xff]  }
  0x59   :  { %475 = vmatprep.subr.bf16.mxu0 %v2198_v8  ;;  %515 = vmatpush1.bf16.msra.mxu1 %v2233_v22  ;;  %v2263_v45 = vld [vmem:[#allocation5 + $0x12c] ss:$16 sps:$4 sm:$0xff]   ;;  %v2236_v46 = vld [vmem:[#allocation5 + $0x180] ss:$16 sps:$4 sm:$0xff]   ;;  %v2240_v47 = vld [vmem:[#allocation5 + $0x1a4] ss:$16 sps:$4 sm:$0xff]  }
  0x5a   :  { %516 = vmatprep.subr.bf16.mxu1 %v2237_v23  ;;  %540 = vmatprep.mubr.bf16.mxu1 %v1899_v33  ;;  %v2265_v48 = vld [vmem:[#allocation5 + $0x128] ss:$16 sps:$4 sm:$0xff]   ;;  %v2266_v49 = vld [vmem:[#allocation5 + $0x14c] ss:$16 sps:$4 sm:$0xff]   ;;  %v2242_v50 = vld [vmem:[#allocation5 + $0x1a0] ss:$16 sps:$4 sm:$0xff]  }
  0x5b   :  { %v2246_v51 = vld [vmem:[#allocation5 + $0x1c4] ss:$16 sps:$4 sm:$0xff]   ;;  %v2268_v52 = vld [vmem:[#allocation5 + $0x148] ss:$16 sps:$4 sm:$0xff]   ;;  %v2269_v53 = vld [vmem:[#allocation5 + $0x16c] ss:$16 sps:$4 sm:$0xff]  }
  0x5c   :  { %476 = vmatpush1.bf16.msra.mxu0 %v2200_v11  ;;  %v2248_v54 = vld [vmem:[#allocation5 + $0x1c0] ss:$16 sps:$4 sm:$0xff]   ;;  %v2252_v55 = vld [vmem:[#allocation5 + $0x1e4] ss:$16 sps:$4 sm:$0xff]   ;;  %v2271_v56 = vld [vmem:[#allocation5 + $0x168] ss:$16 sps:$4 sm:$0xff]  }
  0x5d   :  { %477 = vmatprep.subr.bf16.mxu0 %v2201_v14  ;;  %517 = vmatpush1.bf16.msra.mxu1 %v2239_v26  ;;  %v2272_v57 = vld [vmem:[#allocation5 + $0x18c] ss:$16 sps:$4 sm:$0xff]   ;;  %v2254_v58 = vld [vmem:[#allocation5 + $0x1e0] ss:$16 sps:$4 sm:$0xff]   ;;  %v2274_v59 = vld [vmem:[#allocation5 + $0x188] ss:$16 sps:$4 sm:$0xff]  }
  0x5e   :  { %518 = vmatprep.subr.bf16.mxu1 %v2243_v27  ;;  %v2275_v60 = vld [vmem:[#allocation5 + $0x1ac] ss:$16 sps:$4 sm:$0xff]   ;;  %v2286_v61 = vld [vmem:[#allocation7 + $0x4] ss:$16 sps:$4 sm:$0xff]   ;;  %v2277_v63 = vld [vmem:[#allocation5 + $0x1a8] ss:$16 sps:$4 sm:$0xff]  }
  0x5f   :  { %v2278_v0 = vld [vmem:[#allocation5 + $0x1cc] ss:$16 sps:$4 sm:$0xff]   ;;  %v2284_v1 = vld [vmem:[#allocation7] ss:$16 sps:$4 sm:$0xff]   ;;  %v2292_v2 = vld [vmem:[#allocation7 + $0x24] ss:$16 sps:$4 sm:$0xff]  }
  0x60   :  { %478 = vmatpush1.bf16.msra.mxu0 %v2203_v15  ;;  %v2280_v3 = vld [vmem:[#allocation5 + $0x1c8] ss:$16 sps:$4 sm:$0xff]   ;;  %v2290_v4 = vld [vmem:[#allocation7 + $0x20] ss:$16 sps:$4 sm:$0xff]   ;;  %v2281_v5 = vld [vmem:[#allocation5 + $0x1ec] ss:$16 sps:$4 sm:$0xff]  }
  0x61   :  { %479 = vmatprep.subr.bf16.mxu0 %v2204_v17  ;;  %519 = vmatpush1.bf16.msra.mxu1 %v2245_v30  ;;  %v2298_v6 = vld [vmem:[#allocation7 + $0x44] ss:$16 sps:$4 sm:$0xff]   ;;  %v2283_v7 = vld [vmem:[#allocation5 + $0x1e8] ss:$16 sps:$4 sm:$0xff]   ;;  %v2296_v8 = vld [vmem:[#allocation7 + $0x40] ss:$16 sps:$4 sm:$0xff]  }
  0x62   :  { %520 = vmatprep.subr.bf16.mxu1 %v2249_v32  ;;  %v2289_v9 = vld [vmem:[#allocation7 + $0xc] ss:$16 sps:$4 sm:$0xff]   ;;  %v2304_v10 = vld [vmem:[#allocation7 + $0x64] ss:$16 sps:$4 sm:$0xff]   ;;  %v2287_v11 = vld [vmem:[#allocation7 + $0x8] ss:$16 sps:$4 sm:$0xff]  }
  0x63   :  { %v2302_v12 = vld [vmem:[#allocation7 + $0x60] ss:$16 sps:$4 sm:$0xff]   ;;  %v2295_v13 = vld [vmem:[#allocation7 + $0x2c] ss:$16 sps:$4 sm:$0xff]   ;;  %v2310_v14 = vld [vmem:[#allocation7 + $0x84] ss:$16 sps:$4 sm:$0xff]  }
  0x64   :  { %480 = vmatpush1.bf16.msra.mxu0 %v2206_v20  ;;  %v2293_v15 = vld [vmem:[#allocation7 + $0x28] ss:$16 sps:$4 sm:$0xff]   ;;  %v2308_v16 = vld [vmem:[#allocation7 + $0x80] ss:$16 sps:$4 sm:$0xff]   ;;  %v2301_v17 = vld [vmem:[#allocation7 + $0x4c] ss:$16 sps:$4 sm:$0xff]  }
  0x65   :  { %481 = vmatprep.subr.bf16.mxu0 %v2207_v21  ;;  %521 = vmatpush1.bf16.msra.mxu1 %v2251_v36  ;;  %v2316_v18 = vld [vmem:[#allocation7 + $0xa4] ss:$16 sps:$4 sm:$0xff]   ;;  %v2299_v19 = vld [vmem:[#allocation7 + $0x48] ss:$16 sps:$4 sm:$0xff]   ;;  %v2314_v20 = vld [vmem:[#allocation7 + $0xa0] ss:$16 sps:$4 sm:$0xff]  }
  0x66   :  { %522 = vmatprep.subr.bf16.mxu1 %v2255_v37  ;;  %v2307_v21 = vld [vmem:[#allocation7 + $0x6c] ss:$16 sps:$4 sm:$0xff]   ;;  %v2322_v22 = vld [vmem:[#allocation7 + $0xc4] ss:$16 sps:$4 sm:$0xff]   ;;  %v2305_v23 = vld [vmem:[#allocation7 + $0x68] ss:$16 sps:$4 sm:$0xff]  }
  0x67   :  { %v2328_v26 = vld [vmem:[#allocation7 + $0xe4] ss:$16 sps:$4 sm:$0xff]   ;;  %v2311_v27 = vld [vmem:[#allocation7 + $0x88] ss:$16 sps:$4 sm:$0xff]   ;;  %v2325_v31 = vld [vmem:[#allocation7 + $0xcc] ss:$16 sps:$4 sm:$0xff]  }
  0x68   :  { %482 = vmatpush1.bf16.msra.mxu0 %v2209_v24  ;;  %v2320_v24 = vld [vmem:[#allocation7 + $0xc0] ss:$16 sps:$4 sm:$0xff]   ;;  %v2317_v30 = vld [vmem:[#allocation7 + $0xa8] ss:$16 sps:$4 sm:$0xff]   ;;  %v2331_v33 = vld [vmem:[#allocation7 + $0xec] ss:$16 sps:$4 sm:$0xff]  }
  0x69   :  { %483 = vmatprep.subr.bf16.mxu0 %v2210_v25  ;;  %523 = vmatpush1.bf16.msra.mxu1 %v2259_v40  ;;  %v2313_v25 = vld [vmem:[#allocation7 + $0x8c] ss:$16 sps:$4 sm:$0xff]   ;;  %v2323_v32 = vld [vmem:[#allocation7 + $0xc8] ss:$16 sps:$4 sm:$0xff]   ;;  %v2332_v37 = vld [vmem:[#allocation7 + $0x100] ss:$16 sps:$4 sm:$0xff]  }
  0x6a   :  { %524 = vmatprep.subr.bf16.mxu1 %v2260_v41  ;;  %v2337_v36 = vld [vmem:[#allocation7 + $0x10c] ss:$16 sps:$4 sm:$0xff]   ;;  %v2338_v41 = vld [vmem:[#allocation7 + $0x120] ss:$16 sps:$4 sm:$0xff]   ;;  %s1887_s18 = sshll.u32 %s2666_s1, 4  ;;  %s1888_s18 = int_to_ptr.vmem [resolvable:$true] %s1887_s18 }
  0x6b   :  { %v2343_v40 = vld [vmem:[#allocation7 + $0x12c] ss:$16 sps:$4 sm:$0xff]   ;;  %s2628_s19 = scalar_lea.vmem %s1888_s18, 128  ;;  %p2633_p5 = scmp.lt.s32.totalorder %s1888_s18, %s1888_s18 }
  0x6c   :  { %484 = vmatpush1.bf16.msra.mxu0 %v2212_v28  ;;  %v2326_v28 = vld [vmem:[#allocation7 + $0xe0] ss:$16 sps:$4 sm:$0xff]   ;;  %p2629_p4 = scmp.ne.s32.totalorder %s1888_s18, %s2628_s19  ;;  %p2634_p6 = scmp.lt.s32.totalorder %s2628_s19, %s2628_s19 }
  0x6d   :  { %485 = vmatprep.subr.bf16.mxu0 %v2216_v29  ;;  %525 = vmatpush1.bf16.msra.mxu1 %v2262_v44  ;;  %v2319_v29 = vld [vmem:[#allocation7 + $0xac] ss:$16 sps:$4 sm:$0xff]  }
  0x6e   :  { %526 = vmatprep.subr.bf16.mxu1 %v2263_v45  ;;  %v2349_v44 = vld [vmem:[#allocation7 + $0x14c] ss:$16 sps:$4 sm:$0xff]   ;;  %v2344_v45 = vld [vmem:[#allocation7 + $0x140] ss:$16 sps:$4 sm:$0xff]   ;;  %p2635_p7 = por %p2634_p6, %p2633_p5 }
  0x70   :  { %486 = vmatpush1.bf16.msra.mxu0 %v2218_v34  ;;  %v2329_v34 = vld [vmem:[#allocation7 + $0xe8] ss:$16 sps:$4 sm:$0xff]   ;;  %p2636_p8 = pnand %p2635_p7, %p2629_p4 }
  0x71   :  { %487 = vmatprep.subr.bf16.mxu0 %v2222_v35  ;;  %527 = vmatpush1.bf16.msra.mxu1 %v2265_v48  ;;  %v2334_v35 = vld [vmem:[#allocation7 + $0x104] ss:$16 sps:$4 sm:$0xff]   ;;  %v2355_v48 = vld [vmem:[#allocation7 + $0x16c] ss:$16 sps:$4 sm:$0xff]  }
  0x72   :  { %528 = vmatprep.subr.bf16.mxu1 %v2266_v49  ;;  %v2350_v49 = vld [vmem:[#allocation7 + $0x160] ss:$16 sps:$4 sm:$0xff]  }
  0x74   :  { %488 = vmatpush1.bf16.msra.mxu0 %v2224_v38  ;;  %v2335_v38 = vld [vmem:[#allocation7 + $0x108] ss:$16 sps:$4 sm:$0xff]  }
  0x75   :  { %489 = vmatprep.subr.bf16.mxu0 %v2228_v39  ;;  %529 = vmatpush1.bf16.msra.mxu1 %v2268_v52  ;;  %v2340_v39 = vld [vmem:[#allocation7 + $0x124] ss:$16 sps:$4 sm:$0xff]   ;;  %v2361_v52 = vld [vmem:[#allocation7 + $0x18c] ss:$16 sps:$4 sm:$0xff]  }
  0x76   :  { %530 = vmatprep.subr.bf16.mxu1 %v2269_v53  ;;  %v2356_v53 = vld [vmem:[#allocation7 + $0x180] ss:$16 sps:$4 sm:$0xff]  }
  0x78   :  { %490 = vmatpush1.bf16.msra.mxu0 %v2230_v42  ;;  %v2341_v42 = vld [vmem:[#allocation7 + $0x128] ss:$16 sps:$4 sm:$0xff]  }
  0x79   :  { %491 = vmatprep.subr.bf16.mxu0 %v2234_v43  ;;  %531 = vmatpush1.bf16.msra.mxu1 %v2271_v56  ;;  %v2346_v43 = vld [vmem:[#allocation7 + $0x144] ss:$16 sps:$4 sm:$0xff]   ;;  %v2367_v56 = vld [vmem:[#allocation7 + $0x1ac] ss:$16 sps:$4 sm:$0xff]  }
  0x7a   :  { %532 = vmatprep.subr.bf16.mxu1 %v2272_v57  ;;  %v2362_v57 = vld [vmem:[#allocation7 + $0x1a0] ss:$16 sps:$4 sm:$0xff]  }
  0x7c   :  { %492 = vmatpush1.bf16.msra.mxu0 %v2236_v46  ;;  %v2347_v46 = vld [vmem:[#allocation7 + $0x148] ss:$16 sps:$4 sm:$0xff]  }
  0x7d   :  { %493 = vmatprep.subr.bf16.mxu0 %v2240_v47  ;;  %533 = vmatpush1.bf16.msra.mxu1 %v2274_v59  ;;  %v2352_v47 = vld [vmem:[#allocation7 + $0x164] ss:$16 sps:$4 sm:$0xff]  }
  0x7e   :  { %534 = vmatprep.subr.bf16.mxu1 %v2275_v60  ;;  %v2370_v59 = vld [vmem:[#allocation7 + $0x1c4] ss:$16 sps:$4 sm:$0xff]   ;;  %v2373_v60 = vld [vmem:[#allocation7 + $0x1cc] ss:$16 sps:$4 sm:$0xff]  }
  0x80   :  { %494 = vmatpush1.bf16.msra.mxu0 %v2242_v50  ;;  %v2353_v50 = vld [vmem:[#allocation7 + $0x168] ss:$16 sps:$4 sm:$0xff]  }
  0x81   :  { %495 = vmatprep.subr.bf16.mxu0 %v2246_v51  ;;  %535 = vmatpush1.bf16.msra.mxu1 %v2277_v63  ;;  %v2358_v51 = vld [vmem:[#allocation7 + $0x184] ss:$16 sps:$4 sm:$0xff]  }
  0x82   :  { %536 = vmatprep.subr.bf16.mxu1 %v2278_v0  ;;  %v2376_v63 = vld [vmem:[#allocation7 + $0x1e4] ss:$16 sps:$4 sm:$0xff]   ;;  %v2379_v0 = vld [vmem:[#allocation7 + $0x1ec] ss:$16 sps:$4 sm:$0xff]  }
  0x84   :  { %496 = vmatpush1.bf16.msra.mxu0 %v2248_v54  ;;  %v2359_v54 = vld [vmem:[#allocation7 + $0x188] ss:$16 sps:$4 sm:$0xff]  }
  0x85   :  { %497 = vmatprep.subr.bf16.mxu0 %v2252_v55  ;;  %537 = vmatpush1.bf16.msra.mxu1 %v2280_v3  ;;  %v2364_v55 = vld [vmem:[#allocation7 + $0x1a4] ss:$16 sps:$4 sm:$0xff]  }
  0x86   :  { %538 = vmatprep.subr.bf16.mxu1 %v2281_v5  ;;  %v2382_v3 = vld [vmem:[#allocation7 + $0x204] ss:$16 sps:$4 sm:$0xff]  }
  0x88   :  { %498 = vmatpush1.bf16.msra.mxu0 %v2254_v58  ;;  %v2365_v58 = vld [vmem:[#allocation7 + $0x1a8] ss:$16 sps:$4 sm:$0xff]  }
  0x89   :  { %1345 = vmatprep.subr.bf16.mxu0 %v2286_v61  ;;  %539 = vmatpush1.bf16.msra.mxu1 %v2283_v7  ;;  %v2368_v61 = vld [vmem:[#allocation7 + $0x1c0] ss:$16 sps:$4 sm:$0xff]  }
  0x8a   :  { %1427 = vmatprep.subr.bf16.mxu1 %v2289_v9 }
  0x8b   :  { %500 = vmatmul.mubr.bf16.vlgmr.msra.gmra.mrb[0].mxu0 %v1898_v62 }
  0x8c   :  { %1346 = vmatpush1.bf16.msra.mxu0 %v2284_v1  ;;  %541 = vmatmul.mubr.bf16.vlgmr.msra.gmra.mrb[0].mxu1 %v1898_v62  ;;  %v2371_v62 = vld [vmem:[#allocation7 + $0x1c8] ss:$16 sps:$4 sm:$0xff]   ;;  %v2374_v1 = vld [vmem:[#allocation7 + $0x1e0] ss:$16 sps:$4 sm:$0xff]  }
  0x8d   :  { %1347 = vmatprep.subr.bf16.mxu0 %v2292_v2  ;;  %1428 = vmatpush1.bf16.msra.mxu1 %v2287_v11  ;;  %v2377_v2 = vld [vmem:[#allocation7 + $0x1e8] ss:$16 sps:$4 sm:$0xff]  }
  0x8e   :  { %1429 = vmatprep.subr.bf16.mxu1 %v2295_v13 }
  0x90   :  { %1348 = vmatpush1.bf16.msra.mxu0 %v2290_v4  ;;  %v2385_v4 = vld [vmem:[#allocation7 + $0x20c] ss:$16 sps:$4 sm:$0xff]  }
  0x91   :  { %1349 = vmatprep.subr.bf16.mxu0 %v2298_v6  ;;  %1430 = vmatpush1.bf16.msra.mxu1 %v2293_v15 }
  0x92   :  { %1431 = vmatprep.subr.bf16.mxu1 %v2301_v17 }
  0x94   :  { %1350 = vmatpush1.bf16.msra.mxu0 %v2296_v8 }
  0x95   :  { %1351 = vmatprep.subr.bf16.mxu0 %v2304_v10  ;;  %1432 = vmatpush1.bf16.msra.mxu1 %v2299_v19 }
  0x96   :  { %1433 = vmatprep.subr.bf16.mxu1 %v2307_v21 }
  0x98   :  { %1352 = vmatpush1.bf16.msra.mxu0 %v2302_v12 }
  0x99   :  { %1353 = vmatprep.subr.bf16.mxu0 %v2310_v14  ;;  %1434 = vmatpush1.bf16.msra.mxu1 %v2305_v23 }
  0x9a   :  { %1435 = vmatprep.subr.bf16.mxu1 %v2313_v25 }
  0x9c   :  { %1354 = vmatpush1.bf16.msra.mxu0 %v2308_v16 }
  0x9d   :  { %1355 = vmatprep.subr.bf16.mxu0 %v2316_v18  ;;  %1436 = vmatpush1.bf16.msra.mxu1 %v2311_v27 }
  0x9e   :  { %1437 = vmatprep.subr.bf16.mxu1 %v2319_v29 }
  0xa0   :  { %1356 = vmatpush1.bf16.msra.mxu0 %v2314_v20 }
  0xa1   :  { %1357 = vmatprep.subr.bf16.mxu0 %v2322_v22  ;;  %1438 = vmatpush1.bf16.msra.mxu1 %v2317_v30  ;;  %v2380_v30 = vld [vmem:[#allocation7 + $0x200] ss:$16 sps:$4 sm:$0xff]  }
  0xa2   :  { %1439 = vmatprep.subr.bf16.mxu1 %v2325_v31  ;;  %v2383_v31 = vld [vmem:[#allocation7 + $0x208] ss:$16 sps:$4 sm:$0xff]  }
  0xa4   :  { %1358 = vmatpush1.bf16.msra.mxu0 %v2320_v24 }
  0xa5   :  { %1359 = vmatprep.subr.bf16.mxu0 %v2328_v26  ;;  %1440 = vmatpush1.bf16.msra.mxu1 %v2323_v32 }
  0xa6   :  { %1441 = vmatprep.subr.bf16.mxu1 %v2331_v33  ;;  %v2388_v33 = vld [vmem:[#allocation7 + $0x224] ss:$16 sps:$4 sm:$0xff]  }
  0xa8   :  { %1360 = vmatpush1.bf16.msra.mxu0 %v2326_v28 }
  0xa9   :  { %1442 = vmatpush1.bf16.msra.mxu1 %v2329_v34  ;;  %1361 = vmatprep.subr.bf16.mxu0 %v2334_v35  ;;  %v2391_v34 = vld [vmem:[#allocation7 + $0x22c] ss:$16 sps:$4 sm:$0xff]   ;;  %v2386_v35 = vld [vmem:[#allocation7 + $0x220] ss:$16 sps:$4 sm:$0xff]  }
  0xaa   :  { %1443 = vmatprep.subr.bf16.mxu1 %v2337_v36  ;;  %v2389_v36 = vld [vmem:[#allocation7 + $0x228] ss:$16 sps:$4 sm:$0xff]  }
  0xac   :  { %1362 = vmatpush1.bf16.msra.mxu0 %v2332_v37  ;;  %v2394_v37 = vld [vmem:[#allocation7 + $0x244] ss:$16 sps:$4 sm:$0xff]  }
  0xad   :  { %1444 = vmatpush1.bf16.msra.mxu1 %v2335_v38  ;;  %1363 = vmatprep.subr.bf16.mxu0 %v2340_v39  ;;  %v2397_v38 = vld [vmem:[#allocation7 + $0x24c] ss:$16 sps:$4 sm:$0xff]   ;;  %v2392_v39 = vld [vmem:[#allocation7 + $0x240] ss:$16 sps:$4 sm:$0xff]  }
  0xae   :  { %1445 = vmatprep.subr.bf16.mxu1 %v2343_v40  ;;  %v2395_v40 = vld [vmem:[#allocation7 + $0x248] ss:$16 sps:$4 sm:$0xff]  }
  0xb0   :  { %1364 = vmatpush1.bf16.msra.mxu0 %v2338_v41  ;;  %v2400_v41 = vld [vmem:[#allocation7 + $0x264] ss:$16 sps:$4 sm:$0xff]  }
  0xb1   :  { %1446 = vmatpush1.bf16.msra.mxu1 %v2341_v42  ;;  %1365 = vmatprep.subr.bf16.mxu0 %v2346_v43  ;;  %v2403_v42 = vld [vmem:[#allocation7 + $0x26c] ss:$16 sps:$4 sm:$0xff]  }
  0xb2   :  { %1447 = vmatprep.subr.bf16.mxu1 %v2349_v44 }
  0xb4   :  { %1366 = vmatpush1.bf16.msra.mxu0 %v2344_v45  ;;  %v2398_v45 = vld [vmem:[#allocation7 + $0x260] ss:$16 sps:$4 sm:$0xff]  }
  0xb5   :  { %1448 = vmatpush1.bf16.msra.mxu1 %v2347_v46  ;;  %1367 = vmatprep.subr.bf16.mxu0 %v2352_v47  ;;  %v2401_v46 = vld [vmem:[#allocation7 + $0x268] ss:$16 sps:$4 sm:$0xff]   ;;  %v2406_v47 = vld [vmem:[#allocation7 + $0x284] ss:$16 sps:$4 sm:$0xff]  }
  0xb6   :  { %1449 = vmatprep.subr.bf16.mxu1 %v2355_v48  ;;  %v2409_v48 = vld [vmem:[#allocation7 + $0x28c] ss:$16 sps:$4 sm:$0xff]  }
  0xb8   :  { %1368 = vmatpush1.bf16.msra.mxu0 %v2350_v49 }
  0xb9   :  { %1450 = vmatpush1.bf16.msra.mxu1 %v2353_v50  ;;  %1369 = vmatprep.subr.bf16.mxu0 %v2358_v51  ;;  %v2404_v50 = vld [vmem:[#allocation7 + $0x280] ss:$16 sps:$4 sm:$0xff]   ;;  %v2407_v51 = vld [vmem:[#allocation7 + $0x288] ss:$16 sps:$4 sm:$0xff]  }
  0xba   :  { %1451 = vmatprep.subr.bf16.mxu1 %v2361_v52  ;;  %v2412_v52 = vld [vmem:[#allocation7 + $0x2a4] ss:$16 sps:$4 sm:$0xff]  }
  0xbc   :  { %1370 = vmatpush1.bf16.msra.mxu0 %v2356_v53  ;;  %v2415_v53 = vld [vmem:[#allocation7 + $0x2ac] ss:$16 sps:$4 sm:$0xff]  }
  0xbd   :  { %1452 = vmatpush1.bf16.msra.mxu1 %v2359_v54  ;;  %1371 = vmatprep.subr.bf16.mxu0 %v2364_v55  ;;  %v2410_v54 = vld [vmem:[#allocation7 + $0x2a0] ss:$16 sps:$4 sm:$0xff]   ;;  %v2413_v55 = vld [vmem:[#allocation7 + $0x2a8] ss:$16 sps:$4 sm:$0xff]  }
  0xbe   :  { %1453 = vmatprep.subr.bf16.mxu1 %v2367_v56  ;;  %v2418_v56 = vld [vmem:[#allocation7 + $0x2c4] ss:$16 sps:$4 sm:$0xff]  }
  0xc0   :  { %1372 = vmatpush1.bf16.msra.mxu0 %v2362_v57  ;;  %v2421_v57 = vld [vmem:[#allocation7 + $0x2cc] ss:$16 sps:$4 sm:$0xff]  }
  0xc1   :  { %1454 = vmatpush1.bf16.msra.mxu1 %v2365_v58  ;;  %1373 = vmatprep.subr.bf16.mxu0 %v2370_v59  ;;  %v2416_v59 = vld [vmem:[#allocation7 + $0x2c0] ss:$16 sps:$4 sm:$0xff]  }
  0xc2   :  { %1455 = vmatprep.subr.bf16.mxu1 %v2373_v60  ;;  %v2419_v60 = vld [vmem:[#allocation7 + $0x2c8] ss:$16 sps:$4 sm:$0xff]  }
  0xc4   :  { %1374 = vmatpush1.bf16.msra.mxu0 %v2368_v61  ;;  %v2424_v61 = vld [vmem:[#allocation7 + $0x2e4] ss:$16 sps:$4 sm:$0xff]  }
  0xc5   :  { %1456 = vmatpush1.bf16.msra.mxu1 %v2371_v62  ;;  %1375 = vmatprep.subr.bf16.mxu0 %v2376_v63  ;;  %v2427_v62 = vld [vmem:[#allocation7 + $0x2ec] ss:$16 sps:$4 sm:$0xff]  }
  0xc6   :  { %1457 = vmatprep.subr.bf16.mxu1 %v2379_v0  ;;  %v2422_v0 = vld [vmem:[#allocation7 + $0x2e0] ss:$16 sps:$4 sm:$0xff]  }
  0xc8   :  { %1376 = vmatpush1.bf16.msra.mxu0 %v2374_v1  ;;  %v2425_v1 = vld [vmem:[#allocation7 + $0x2e8] ss:$16 sps:$4 sm:$0xff]  }
  0xc9   :  { %1458 = vmatpush1.bf16.msra.mxu1 %v2377_v2  ;;  %1386 = vmatprep.subr.bf16.mxu0 %v2382_v3  ;;  %v2430_v2 = vld [vmem:[#allocation7 + $0x304] ss:$16 sps:$4 sm:$0xff]   ;;  %v2433_v3 = vld [vmem:[#allocation7 + $0x30c] ss:$16 sps:$4 sm:$0xff]  }
  0xca   :  { %1468 = vmatprep.subr.bf16.mxu1 %v2385_v4  ;;  %v2428_v4 = vld [vmem:[#allocation7 + $0x300] ss:$16 sps:$4 sm:$0xff]  }
 0x15e   :  { %v501_v5 = vpop.f32.mrb[0].mxu0 }
 0x15f   :  { %v549_v6 = vsub.f32 0.0, %v501_v5  ;;  %v503_v7 = vpop.f32.mrb[1].mxu0  ;;  %v2751_v13 = vpop.f32.mrb[0].mxu1 }
 0x160   :  { %v550_v8 = vsub.f32 0.0, %v503_v7  ;;  %v505_v9 = vpop.f32.mrb[2].mxu0  ;;  %v544_v14 = vpop.f32.mrb[1].mxu1  ;;  %v551_v58 = vsub.f32 0.0, %v2751_v13 }
 0x161   :  { %v553_v10 = vmul.f32 1.442695, %v549_v6  ;;  %v506_v11 = vpop.f32.mrb[3].mxu0  ;;  %v552_v15 = vsub.f32 0.0, %v544_v14  ;;  %v546_v16 = vpop.f32.mrb[2].mxu1 }
 0x162   :  { %v555_v12 = vmul.f32 1.442695, %v550_v8  ;;  %v547_v18 = vpop.f32.mrb[3].mxu1  ;;  %v557_v63 = vmul.f32 1.442695, %v551_v58  ;;  %v2495_v58 = vld [vmem:[#allocation8 + $0xa0] sm:$0xff]  }
 0x163   :  { %2508 = vpow2.f32 %v553_v10  ;;  %v559_v21 = vmul.f32 1.442695, %v552_v15  ;;  %v2436_v6 = vld [vmem:[#allocation7 + $0x324] ss:$16 sps:$4 sm:$0xff]   ;;  %v2434_v8 = vld [vmem:[#allocation7 + $0x320] ss:$16 sps:$4 sm:$0xff]  }
 0x164   :  { %2510 = vpow2.f32 %v555_v12  ;;  %v2437_v9 = vld [vmem:[#allocation7 + $0x328] ss:$16 sps:$4 sm:$0xff]   ;;  %v2442_v10 = vld [vmem:[#allocation7 + $0x344] ss:$16 sps:$4 sm:$0xff]   ;;  %v2445_v11 = vld [vmem:[#allocation7 + $0x34c] ss:$16 sps:$4 sm:$0xff]  }
 0x165   :  { %v2440_v12 = vld [vmem:[#allocation7 + $0x340] ss:$16 sps:$4 sm:$0xff]   ;;  %v2448_v16 = vld [vmem:[#allocation7 + $0x364] ss:$16 sps:$4 sm:$0xff]  }
 0x16d   :  { %v2509_v17 = vpop.eup %2508 }
 0x16e   :  { %v2511_v19 = vpop.eup %2510  ;;  %v561_v20 = vadd.f32 1.0, %v2509_v17  ;;  %v2451_v17 = vld [vmem:[#allocation7 + $0x36c] ss:$16 sps:$4 sm:$0xff]  }
 0x16f   :  { %v562_v22 = vadd.f32 1.0, %v2511_v19  ;;  %v2446_v19 = vld [vmem:[#allocation7 + $0x360] ss:$16 sps:$4 sm:$0xff]  }
 0x170   :  { %2512 = vrcp.f32 %v561_v20  ;;  %v2449_v20 = vld [vmem:[#allocation7 + $0x368] ss:$16 sps:$4 sm:$0xff]  }
 0x171   :  { %2514 = vrcp.f32 %v562_v22  ;;  %v2457_v22 = vld [vmem:[#allocation7 + $0x38c] ss:$16 sps:$4 sm:$0xff]  }
 0x172   :  { %2516 = vpow2.f32 %v559_v21  ;;  %v2454_v21 = vld [vmem:[#allocation7 + $0x384] ss:$16 sps:$4 sm:$0xff]  }
 0x17a   :  { %v2513_v23 = vpop.eup %2512 }
 0x17b   :  { %v2515_v24 = vpop.eup %2514  ;;  %v569_v25 = vmul.f32 %v2513_v23, %v501_v5  ;;  %v2431_v5 = vld [vmem:[#allocation7 + $0x308] ss:$16 sps:$4 sm:$0xff]   ;;  %v2452_v23 = vld [vmem:[#allocation7 + $0x380] ss:$16 sps:$4 sm:$0xff]  }
 0x17c   :  { %v2517_v26 = vpop.eup %2516  ;;  %v570_v27 = vmul.f32 %v2515_v24, %v503_v7  ;;  %v2439_v7 = vld [vmem:[#allocation7 + $0x32c] ss:$16 sps:$4 sm:$0xff]   ;;  %v2455_v24 = vld [vmem:[#allocation7 + $0x388] ss:$16 sps:$4 sm:$0xff]  }
 0x17d   :  { %v564_v28 = vadd.f32 1.0, %v2517_v26  ;;  %v573_v32 = vpack.c.bf16 %v569_v25, %v569_v25  ;;  %v2460_v25 = vld [vmem:[#allocation7 + $0x3a4] ss:$16 sps:$4 sm:$0xff]   ;;  %v2463_v26 = vld [vmem:[#allocation7 + $0x3ac] ss:$16 sps:$4 sm:$0xff]  }
 0x17e   :  { %v574_v29 = vpack.c.bf16 %v570_v27, %v570_v27  ;;  %v2458_v27 = vld [vmem:[#allocation7 + $0x3a0] ss:$16 sps:$4 sm:$0xff]  }
 0x17f   :  { %2518 = vrcp.f32 %v564_v28  ;;  %v2461_v28 = vld [vmem:[#allocation7 + $0x3a8] ss:$16 sps:$4 sm:$0xff]  }
 0x180   :  { %1377 = vmatprep.mubr.bf16.mxu0 %v574_v29  ;;  %1459 = vmatprep.mubr.bf16.mxu1 %v574_v29  ;;  %2520 = vpow2.f32 %v557_v63  ;;  %v2466_v29 = vld [vmem:[#allocation7 + $0x3c4] ss:$16 sps:$4 sm:$0xff]  }
 0x181   :  { %1378 = vmatmul.mubr.bf16.vlgmr.msra.gmra.mrb[4].mxu0 %v573_v32  ;;  %1460 = vmatmul.mubr.bf16.vlgmr.msra.gmra.mrb[4].mxu1 %v573_v32  ;;  %v2467_v32 = vld [vmem:[#allocation7 + $0x3c8] ss:$16 sps:$4 sm:$0xff]   ;;  %v2500_v63 = vld [vmem:[#allocation8 + $0x70] sm:$0xff]  }
 0x182   :  { %1387 = vmatpush1.bf16.msra.mxu0 %v2380_v30  ;;  %1469 = vmatpush1.bf16.msra.mxu1 %v2383_v31  ;;  %v2469_v30 = vld [vmem:[#allocation7 + $0x3cc] ss:$16 sps:$4 sm:$0xff]   ;;  %v2464_v31 = vld [vmem:[#allocation7 + $0x3c0] ss:$16 sps:$4 sm:$0xff]  }
 0x183   :  { %1388 = vmatprep.subr.bf16.mxu0 %v2388_v33  ;;  %1470 = vmatprep.subr.bf16.mxu1 %v2391_v34  ;;  %v2472_v33 = vld [vmem:[#allocation7 + $0x3e4] ss:$16 sps:$4 sm:$0xff]   ;;  %v2475_v34 = vld [vmem:[#allocation7 + $0x3ec] ss:$16 sps:$4 sm:$0xff]  }
 0x186   :  { %1389 = vmatpush1.bf16.msra.mxu0 %v2386_v35  ;;  %1471 = vmatpush1.bf16.msra.mxu1 %v2389_v36  ;;  %v2470_v36 = vld [vmem:[#allocation7 + $0x3e0] ss:$16 sps:$4 sm:$0xff]  }
 0x187   :  { %1390 = vmatprep.subr.bf16.mxu0 %v2394_v37  ;;  %1472 = vmatprep.subr.bf16.mxu1 %v2397_v38  ;;  %v2473_v37 = vld [vmem:[#allocation7 + $0x3e8] ss:$16 sps:$4 sm:$0xff]  }
 0x189   :  { %v2519_v43 = vpop.eup %2518 }
 0x18a   :  { %v572_v44 = vmul.f32 %v2519_v43, %v544_v14  ;;  %1391 = vmatpush1.bf16.msra.mxu0 %v2392_v39  ;;  %1473 = vmatpush1.bf16.msra.mxu1 %v2395_v40  ;;  %v2443_v14 = vld [vmem:[#allocation7 + $0x348] ss:$16 sps:$4 sm:$0xff]   ;;  %v2521_v15 = vpop.eup %2520  ;;  %v2476_v40 = vld [vmem:[#allocation8 + $0x40] sm:$0xff]  }
 0x18b   :  { %1392 = vmatprep.subr.bf16.mxu0 %v2400_v41  ;;  %1474 = vmatprep.subr.bf16.mxu1 %v2403_v42  ;;  %v563_v18 = vadd.f32 1.0, %v2521_v15  ;;  %v2477_v41 = vld [vmem:[#allocation8 + $0xc0] sm:$0xff]  }
 0x18c   :  { %v576_v49 = vpack.c.bf16 %v572_v44, %v572_v44  ;;  %v2478_v42 = vld [vmem:[#allocation8] sm:$0xff]   ;;  %v2480_v44 = vld [vmem:[#allocation8 + $0x48] sm:$0xff]  }
 0x18d   :  { %2522 = vrcp.f32 %v563_v18  ;;  %v2479_v43 = vld [vmem:[#allocation8 + $0x80] sm:$0xff]  }
 0x18e   :  { %1393 = vmatpush1.bf16.msra.mxu0 %v2398_v45  ;;  %1475 = vmatpush1.bf16.msra.mxu1 %v2401_v46  ;;  %v2481_v45 = vld [vmem:[#allocation8 + $0xc8] sm:$0xff]  }
 0x18f   :  { %1394 = vmatprep.subr.bf16.mxu0 %v2406_v47  ;;  %1476 = vmatprep.subr.bf16.mxu1 %v2409_v48  ;;  %v2482_v46 = vld [vmem:[#allocation8 + $0x8] sm:$0xff]   ;;  %v2485_v48 = vld [vmem:[#allocation8 + $0xd0] sm:$0xff]  }
 0x190   :  { %1418 = vmatprep.mubr.bf16.mxu0 %v576_v49  ;;  %1500 = vmatprep.mubr.bf16.mxu1 %v576_v49  ;;  %v2483_v47 = vld [vmem:[#allocation8 + $0x88] sm:$0xff]   ;;  %v2486_v49 = vld [vmem:[#allocation8 + $0x10] sm:$0xff]  }
 0x192   :  { %1395 = vmatpush1.bf16.msra.mxu0 %v2404_v50  ;;  %1477 = vmatpush1.bf16.msra.mxu1 %v2407_v51  ;;  %v2487_v50 = vld [vmem:[#allocation8 + $0x90] sm:$0xff]   ;;  %v2488_v51 = vld [vmem:[#allocation8 + $0x58] sm:$0xff]  }
 0x193   :  { %1396 = vmatprep.subr.bf16.mxu0 %v2412_v52  ;;  %1478 = vmatprep.subr.bf16.mxu1 %v2415_v53  ;;  %v2489_v52 = vld [vmem:[#allocation8 + $0xd8] sm:$0xff]  }
 0x194   :  { %v2490_v53 = vld [vmem:[#allocation8 + $0x18] sm:$0xff]  }
 0x196   :  { %1397 = vmatpush1.bf16.msra.mxu0 %v2410_v54  ;;  %1479 = vmatpush1.bf16.msra.mxu1 %v2413_v55  ;;  %v2491_v54 = vld [vmem:[#allocation8 + $0x98] sm:$0xff]   ;;  %v2492_v55 = vld [vmem:[#allocation8 + $0x60] sm:$0xff]  }
 0x197   :  { %1398 = vmatprep.subr.bf16.mxu0 %v2418_v56  ;;  %1480 = vmatprep.subr.bf16.mxu1 %v2421_v57  ;;  %v2523_v35 = vpop.eup %2522  ;;  %v2493_v56 = vld [vmem:[#allocation8 + $0xe0] sm:$0xff]  }
 0x198   :  { %v571_v38 = vmul.f32 %v2523_v35, %v2751_v13  ;;  %v2484_v13 = vld [vmem:[#allocation8 + $0x50] sm:$0xff]   ;;  %v2494_v57 = vld [vmem:[#allocation8 + $0x20] sm:$0xff]  }
 0x19a   :  { %1399 = vmatpush1.bf16.msra.mxu0 %v2416_v59  ;;  %1481 = vmatpush1.bf16.msra.mxu1 %v2419_v60  ;;  %v575_v39 = vpack.c.bf16 %v571_v38, %v571_v38  ;;  %v2496_v59 = vld [vmem:[#allocation8 + $0x68] sm:$0xff]  }
 0x19b   :  { %1400 = vmatprep.subr.bf16.mxu0 %v2424_v61  ;;  %1482 = vmatprep.subr.bf16.mxu1 %v2427_v62  ;;  %v2497_v60 = vld [vmem:[#allocation8 + $0xe8] sm:$0xff]  }
 0x19c   :  { %v2498_v61 = vld [vmem:[#allocation8 + $0x28] sm:$0xff]  }
 0x19d   :  { %v2499_v62 = vld [vmem:[#allocation8 + $0xa8] sm:$0xff]  }
 0x19e   :  { %1401 = vmatpush1.bf16.msra.mxu0 %v2422_v0  ;;  %1483 = vmatpush1.bf16.msra.mxu1 %v2425_v1  ;;  %v2501_v0 = vld [vmem:[#allocation8 + $0xf0] sm:$0xff]  }
 0x19f   :  { %1402 = vmatprep.subr.bf16.mxu0 %v2430_v2  ;;  %1484 = vmatprep.subr.bf16.mxu1 %v2433_v3  ;;  %v2502_v1 = vld [vmem:[#allocation8 + $0x30] sm:$0xff]   ;;  %v2504_v3 = vld [vmem:[#allocation8 + $0x78] sm:$0xff]  }
 0x1a0   :  { %v2503_v2 = vld [vmem:[#allocation8 + $0xb0] sm:$0xff]  }
 0x1a2   :  { %1403 = vmatpush1.bf16.msra.mxu0 %v2428_v4  ;;  %1485 = vmatpush1.bf16.msra.mxu1 %v2431_v5  ;;  %v2505_v4 = vld [vmem:[#allocation8 + $0xf8] sm:$0xff]  }
 0x1a3   :  { %1404 = vmatprep.subr.bf16.mxu0 %v2436_v6  ;;  %1486 = vmatprep.subr.bf16.mxu1 %v2439_v7  ;;  %v2506_v5 = vld [vmem:[#allocation8 + $0x38] sm:$0xff]  }
 0x1a4   :  { %v2507_v6 = vld [vmem:[#allocation8 + $0xb8] sm:$0xff]  }
 0x1a6   :  { %1405 = vmatpush1.bf16.msra.mxu0 %v2434_v8  ;;  %1487 = vmatpush1.bf16.msra.mxu1 %v2437_v9 }
 0x1a7   :  { %1406 = vmatprep.subr.bf16.mxu0 %v2442_v10  ;;  %1488 = vmatprep.subr.bf16.mxu1 %v2445_v11 }
 0x1aa   :  { %1407 = vmatpush1.bf16.msra.mxu0 %v2440_v12  ;;  %1489 = vmatpush1.bf16.msra.mxu1 %v2443_v14 }
 0x1ab   :  { %1408 = vmatprep.subr.bf16.mxu0 %v2448_v16  ;;  %1490 = vmatprep.subr.bf16.mxu1 %v2451_v17 }
 0x1ae   :  { %1409 = vmatpush1.bf16.msra.mxu0 %v2446_v19  ;;  %1491 = vmatpush1.bf16.msra.mxu1 %v2449_v20 }
 0x1af   :  { %1410 = vmatprep.subr.bf16.mxu0 %v2454_v21  ;;  %1492 = vmatprep.subr.bf16.mxu1 %v2457_v22 }
 0x1b2   :  { %1411 = vmatpush1.bf16.msra.mxu0 %v2452_v23  ;;  %1493 = vmatpush1.bf16.msra.mxu1 %v2455_v24 }
 0x1b3   :  { %1412 = vmatprep.subr.bf16.mxu0 %v2460_v25  ;;  %1494 = vmatprep.subr.bf16.mxu1 %v2463_v26 }
 0x1b6   :  { %1413 = vmatpush1.bf16.msra.mxu0 %v2458_v27  ;;  %1495 = vmatpush1.bf16.msra.mxu1 %v2461_v28 }
 0x1b7   :  { %1414 = vmatprep.subr.bf16.mxu0 %v2466_v29  ;;  %1496 = vmatprep.subr.bf16.mxu1 %v2469_v30 }
 0x1ba   :  { %1415 = vmatpush1.bf16.msra.mxu0 %v2464_v31  ;;  %1497 = vmatpush1.bf16.msra.mxu1 %v2467_v32 }
 0x1bb   :  { %1416 = vmatprep.subr.bf16.mxu0 %v2472_v33  ;;  %1498 = vmatprep.subr.bf16.mxu1 %v2475_v34 }
 0x1be   :  { %1417 = vmatpush1.bf16.msra.mxu0 %v2470_v36  ;;  %1499 = vmatpush1.bf16.msra.mxu1 %v2473_v37 }
 0x1bf   :  { %2125 = vmatprep.subr.bf16.mxu0 %v2476_v40  ;;  %2147 = vmatprep.subr.bf16.mxu1 %v2477_v41 }
 0x1c1   :  { %1419 = vmatmul.mubr.bf16.vlgmr.msra.gmra.mrb[4].mxu0 %v575_v39  ;;  %1501 = vmatmul.mubr.bf16.vlgmr.msra.gmra.mrb[4].mxu1 %v575_v39 }
 0x1c2   :  { %2126 = vmatpush3.bf16.msra.mxu0 %v2478_v42  ;;  %2148 = vmatpush3.bf16.msra.mxu1 %v2479_v43 }
 0x1c3   :  { %2127 = vmatprep.subr.bf16.mxu0 %v2480_v44  ;;  %2149 = vmatprep.subr.bf16.mxu1 %v2481_v45 }
 0x1c6   :  { %2128 = vmatpush3.bf16.msra.mxu0 %v2482_v46  ;;  %2150 = vmatpush3.bf16.msra.mxu1 %v2483_v47  ;;  %v2092_v46 = vld [vmem:[%s2774_s4] ss:$0 sm:$0xff] }
 0x1c7   :  { %2129 = vmatprep.subr.bf16.mxu0 %v2484_v13  ;;  %2151 = vmatprep.subr.bf16.mxu1 %v2485_v48 }
 0x1ca   :  { %2130 = vmatpush3.bf16.msra.mxu0 %v2486_v49  ;;  %2152 = vmatpush3.bf16.msra.mxu1 %v2487_v50 }
 0x1cb   :  { %2131 = vmatprep.subr.bf16.mxu0 %v2488_v51  ;;  %2153 = vmatprep.subr.bf16.mxu1 %v2489_v52 }
 0x1ce   :  { %2132 = vmatpush3.bf16.msra.mxu0 %v2490_v53  ;;  %2154 = vmatpush3.bf16.msra.mxu1 %v2491_v54 }
 0x1cf   :  { %2133 = vmatprep.subr.bf16.mxu0 %v2492_v55  ;;  %2155 = vmatprep.subr.bf16.mxu1 %v2493_v56 }
 0x1d2   :  { %2134 = vmatpush3.bf16.msra.mxu0 %v2494_v57  ;;  %2156 = vmatpush3.bf16.msra.mxu1 %v2495_v58 }
 0x1d3   :  { %2135 = vmatprep.subr.bf16.mxu0 %v2496_v59  ;;  %2157 = vmatprep.subr.bf16.mxu1 %v2497_v60 }
 0x1d6   :  { %2136 = vmatpush3.bf16.msra.mxu0 %v2498_v61  ;;  %2158 = vmatpush3.bf16.msra.mxu1 %v2499_v62 }
 0x1d7   :  { %2137 = vmatprep.subr.bf16.mxu0 %v2500_v63  ;;  %2159 = vmatprep.subr.bf16.mxu1 %v2501_v0 }
 0x1da   :  { %2138 = vmatpush3.bf16.msra.mxu0 %v2502_v1  ;;  %2160 = vmatpush3.bf16.msra.mxu1 %v2503_v2 }
 0x1db   :  { %2139 = vmatprep.subr.bf16.mxu0 %v2504_v3  ;;  %2161 = vmatprep.subr.bf16.mxu1 %v2505_v4 }
 0x1de   :  { %2140 = vmatpush3.bf16.msra.mxu0 %v2506_v5  ;;  %2162 = vmatpush3.bf16.msra.mxu1 %v2507_v6 }
 0x294   :  { %v1420_v7 = vpop.f32.mrb[4].mxu0  ;;  %v1502_v8 = vpop.f32.mrb[4].mxu1 }
 0x295   :  { %v1509_v9 = vsub.f32 0.0, %v1420_v7  ;;  %v1511_v10 = vsub.f32 0.0, %v1502_v8  ;;  %v1422_v11 = vpop.f32.mrb[5].mxu0  ;;  %v1504_v12 = vpop.f32.mrb[5].mxu1 }
 0x296   :  { %v1510_v14 = vsub.f32 0.0, %v1422_v11  ;;  %v1512_v15 = vsub.f32 0.0, %v1504_v12  ;;  %v1424_v16 = vpop.f32.mrb[6].mxu0  ;;  %v1506_v17 = vpop.f32.mrb[6].mxu1 }
 0x297   :  { %v1513_v18 = vmul.f32 1.442695, %v1509_v9  ;;  %v1517_v19 = vmul.f32 1.442695, %v1511_v10  ;;  %v1425_v20 = vpop.f32.mrb[7].mxu0  ;;  %v1507_v21 = vpop.f32.mrb[7].mxu1 }
 0x298   :  { %v1515_v22 = vmul.f32 1.442695, %v1510_v14  ;;  %v1519_v23 = vmul.f32 1.442695, %v1512_v15 }
 0x299   :  { %2524 = vpow2.f32 %v1513_v18 }
 0x29a   :  { %2526 = vpow2.f32 %v1517_v19 }
 0x29b   :  { %2528 = vpow2.f32 %v1515_v22 }
 0x29c   :  { %2530 = vpow2.f32 %v1519_v23 }
 0x2a3   :  { %v2525_v24 = vpop.eup %2524 }
 0x2a4   :  { %v2527_v25 = vpop.eup %2526  ;;  %v1521_v26 = vadd.f32 1.0, %v2525_v24 }
 0x2a5   :  { %v2529_v27 = vpop.eup %2528  ;;  %v1523_v28 = vadd.f32 1.0, %v2527_v25 }
 0x2a6   :  { %v2531_v29 = vpop.eup %2530  ;;  %2532 = vrcp.f32 %v1521_v26  ;;  %v1522_v30 = vadd.f32 1.0, %v2529_v27 }
 0x2a7   :  { %2534 = vrcp.f32 %v1523_v28  ;;  %v1524_v31 = vadd.f32 1.0, %v2531_v29 }
 0x2a8   :  { %2536 = vrcp.f32 %v1522_v30 }
 0x2a9   :  { %2538 = vrcp.f32 %v1524_v31 }
 0x2b0   :  { %v2533_v32 = vpop.eup %2532 }
 0x2b1   :  { %v2535_v33 = vpop.eup %2534  ;;  %v1529_v35 = vmul.f32 %v2533_v32, %v1420_v7 }
 0x2b2   :  { %v2537_v34 = vpop.eup %2536  ;;  %v1531_v37 = vmul.f32 %v2535_v33, %v1502_v8 }
 0x2b3   :  { %v2539_v36 = vpop.eup %2538  ;;  %v1530_v38 = vmul.f32 %v2537_v34, %v1422_v11  ;;  %v1533_v41 = vpack.c.bf16 %v1529_v35, %v1529_v35 }
 0x2b4   :  { %v1532_v39 = vmul.f32 %v2539_v36, %v1504_v12  ;;  %v1535_v43 = vpack.c.bf16 %v1531_v37, %v1531_v37 }
 0x2b5   :  { %v1534_v40 = vpack.c.bf16 %v1530_v38, %v1530_v38 }
 0x2b6   :  { %v1536_v42 = vpack.c.bf16 %v1532_v39, %v1532_v39 }
 0x2b7   :  { %1832 = vmatprep.mubr.bf16.mxu0 %v1534_v40 }
 0x2b8   :  { %1872 = vmatprep.mubr.bf16.mxu1 %v1536_v42  ;;  %1833 = vmatmul.mubr.bf16.vlgmr.msra.gmra.mrb[8].mxu0 %v1533_v41 }
 0x2b9   :  { %1873 = vmatmul.mubr.bf16.vlgmr.msra.gmra.mrb[8].mxu1 %v1535_v43 }
 0x38b   :  { %v2141_v44 = vpop.f32.mrb[8].mxu0 }
 0x38c   :  { %v2163_v45 = vpop.f32.mrb[8].mxu1  ;;  %v2142_v47 = vpop.f32.mrb[9].mxu0 }
 0x38d   :  { %v2143_v13 = vadd.f32 %v2142_v47, %v2141_v44  ;;  %v2164_v48 = vpop.f32.mrb[9].mxu1  ;;  %v2144_v49 = vpop.f32.mrb[10].mxu0 }
 0x38e   :  { %v2165_v50 = vadd.f32 %v2164_v48, %v2163_v45  ;;  %v2166_v51 = vpop.f32.mrb[10].mxu1  ;;  %v2145_v52 = vpop.f32.mrb[11].mxu0 }
 0x38f   :  { %v1835_v53 = vadd.f32 %v2143_v13, %v2092_v46  ;;  %v2167_v54 = vpop.f32.mrb[11].mxu1 }
 0x391   :  { %v1875_v55 = vadd.f32 %v2165_v50, %v1835_v53 }
 0x393   :  { %1880 = vst [vmem:[#allocation10] sm:$0xff] %v1875_v55 }
 0x394   :  { %2639 = shalt.err (!%p2636_p8)
}
 0x395   :  { %s2640_s21 = scalar_lea.hbm %s2775_s5, 128 }
 0x396   :  { %p2641_p9 = scmp.ne.s32.totalorder %s2775_s5, %s2640_s21  ;;  %p2644_p10 = scmp.lt.u32.totalorder %s2640_s21, %s2775_s5 }
 0x398   :  { %p2646_p11 = pnand %p2644_p10, %p2641_p9 }
 0x39a   :  { %2649 = shalt.err (!%p2646_p11)
}
 0x39b   :  { %1890 = dma.vmem_to_hbm [thread:$0]  %s1888_s18, 128, %s2775_s5, [#allocation4]  }
 0x39c   :  { %2656 = dma.done.wait [#allocation4], 128  }
 0x39d   :  { %2657 = vsyncadd [#allocation4], 4294967168 }
 0x39e   :  { %1894 = vsyncpa [#allocation3], 1 }
 0x39f   :  { %1895 = vsyncpa [#allocation6], 1 }
 0x3a0   :  { %1896 = vsyncpa [#allocation9], 1 }
 0x3a1   :  { %1897 = vsyncpa [#allocation4], 1 }

</bundles_post_ra>
